<compile_context>
chip_gen: v7x
topology: tpu7x:2x2x1
jax: 0.10.0
libtpu: 0.0.40
codegen_flags: <defaults>
</compile_context>

<pallas_src>
import math

import numpy as np
import jax
import jax.numpy as jnp
from jax.experimental import pallas as pl
from jax.experimental.pallas import tpu as pltpu


_VMEM_BUDGET = 16 * 1024 * 1024   # target "hot" per-step VMEM (tiles + f32 intermediate)
_VMEM_LIMIT = 32 * 1024 * 1024    # explicit scoped-VMEM limit for both pallas_calls
_MAX_FOLD_W = 4096                # cap on folded row width (bounds selector / intermediate)


def _one_hot_fold_kernel(x_ref, sel_ref, cls_ref, o_ref):
    """x (TN, k) int32 ids; sel (k, W) bf16; cls (1, W) f32 -> o (TN, W).

    k consecutive one-hot rows of width C are folded into one lane-dense
    W = k*C wide output row.  sel[i, c] = 1 iff c // C == i, cls[0, c] = c % C.
    """
    # Valid ids are < 128 here -> exact in bf16; out-of-range ids never round
    # below 256 (and negatives stay negative), so they still match no class.
    ids = x_ref[...].astype(jnp.bfloat16)                               # (TN, k)
    # expanded[r, c] = ids[r, c // C]: tiny bf16 MXU matmul (MXU otherwise idle),
    # exactly one nonzero term per output -> exact in f32 accumulation.
    expanded = jnp.dot(ids, sel_ref[...],
                       preferred_element_type=jnp.float32)             # (TN, W) f32
    # f32 compare (v5e VPU has no native bf16).
    o_ref[...] = (expanded == cls_ref[...]).astype(o_ref.dtype)


def _one_hot_wide_kernel(x_ref, o_ref):
    """x (TN, 1) int32 ids -> o (TN, TC): classes [j*TC, (j+1)*TC) of each row."""
    TC = o_ref.shape[-1]
    ids = x_ref[...]                                                    # (TN, 1)
    col = jax.lax.broadcasted_iota(jnp.int32, (1, TC), 1) + pl.program_id(1) * TC
    o_ref[...] = (col == ids).astype(o_ref.dtype)


def _round_up(v, m):
    return ((v + m - 1) // m) * m


def _pick_block_rows(rows, cap, granule):
    """Rows per grid block: multiple of `granule`, <= cap, and split into >= 4
    (>= 2) blocks when the problem is big enough so both v7x TensorCores and
    the DMA pipeline get work."""
    cap = max(granule, (cap // granule) * granule)
    if rows >= 4 * granule:
        cap = min(cap, _round_up(pl.cdiv(rows, 4), granule))
    elif rows >= 2 * granule:
        cap = min(cap, _round_up(pl.cdiv(rows, 2), granule))
    if cap >= rows:
        return rows               # single full-extent block (always legal)
    return cap


def one_hot(x, num_classes, dtype=jnp.int8):
    """Pallas equivalent of torch.nn.functional.one_hot(x, num_classes)."""
    C = int(num_classes)
    if C <= 0:
        # TODO(synk): torch's num_classes=-1 (infer max from data) is not supported.
        raise ValueError("num_classes must be a positive static integer")
    orig_shape = tuple(x.shape)
    N = math.prod(orig_shape) if orig_shape else 1
    if N == 0:
        return jnp.zeros(orig_shape + (C,), dtype=dtype)

    x_flat = x.reshape(N).astype(jnp.int32)
    itemsize = jnp.dtype(dtype).itemsize
    granule = {1: 32, 2: 16}.get(itemsize, 8)   # unmasked sublane tiling per dtype

    W = (C * 128) // math.gcd(C, 128)           # lcm(C, 128)

    if C < 128 and W <= _MAX_FOLD_W:
        # ---- lane-dense fold path (any small C, power of two or not).
        k = W // C
        R = pl.cdiv(N, k)
        N_pad = R * k
        if N_pad != N:
            # TODO(synk): ragged tail still costs one extra HBM pass via out[:N];
            # fully removing it needs an aliased tail kernel.
            x_flat = jnp.pad(x_flat, (0, N_pad - N))
        x2 = x_flat.reshape(R, k)

        # Constant selector / class-index rows, built once and kept resident in
        # VMEM via a constant index_map (no per-step iota/compare rebuild).
        lane = np.arange(W)
        sel = jnp.asarray((lane // C)[None, :] == np.arange(k)[:, None],
                          dtype=jnp.bfloat16)                       # (k, W)
        cls = jnp.asarray((lane % C)[None, :], dtype=jnp.float32)   # (1, W)

        # Per-row VMEM: double-buffered output (2*itemsize) + f32 `expanded`
        # intermediate (+ ~2B compiler temporaries) per element.
        per_row = W * (2 * itemsize + 4 + 2)
        TN = _pick_block_rows(R, _VMEM_BUDGET // per_row, granule)

        out = pl.pallas_call(
            _one_hot_fold_kernel,
            out_shape=jax.ShapeDtypeStruct((R, W), dtype),
            grid=(pl.cdiv(R, TN),),
            in_specs=[pl.BlockSpec((TN, k), lambda i: (i, 0)),
                      pl.BlockSpec((k, W), lambda i: (0, 0)),
                      pl.BlockSpec((1, W), lambda i: (0, 0))],
            out_specs=pl.BlockSpec((TN, W), lambda i: (i, 0)),
            compiler_params=pltpu.CompilerParams(
                dimension_semantics=("parallel",),
                vmem_limit_bytes=_VMEM_LIMIT),
        )(x2, sel, cls)
        out = out.reshape(N_pad, C)          # free: contiguous view of the folded layout
        if N_pad != N:
            out = out[:N]
    else:
        # ---- general / large C: 2-D grid over (row chunks, class chunks).
        # Class axis is tiled even when C % 128 != 0 (only the final chunk is
        # masked), so row chunks stay large and lane-dense.
        TC = C if C <= 2048 else 2048
        per_row = TC * (2 * itemsize + 2)
        TN = _pick_block_rows(N, min(8192, _VMEM_BUDGET // per_row), granule)
        x2 = x_flat.reshape(N, 1)
        out = pl.pallas_call(
            _one_hot_wide_kernel,
            out_shape=jax.ShapeDtypeStruct((N, C), dtype),
            grid=(pl.cdiv(N, TN), pl.cdiv(C, TC)),
            in_specs=[pl.BlockSpec((TN, 1), lambda i, j: (i, 0))],
            out_specs=pl.BlockSpec((TN, TC), lambda i, j: (i, j)),
            compiler_params=pltpu.CompilerParams(
                dimension_semantics=("parallel", "parallel"),
                vmem_limit_bytes=_VMEM_LIMIT),
        )(x2)

    return out.reshape(orig_shape + (C,))


class OneHot:
    """Mirror of the PyTorch nn.Module; forward runs the Pallas kernel.

    Note: output dtype defaults to int8 (torch returns int64); values are the
    same 0/1 -- pass dtype=jnp.int32 (etc.) if a wider integer is needed.
    """

    def __init__(self, num_classes, dtype=jnp.int8):
        self._num_classes = num_classes
        self._dtype = dtype

    def __call__(self, x):
        return one_hot(x, self._num_classes, dtype=self._dtype)


if __name__ == "__main__":
    key = jax.random.PRNGKey(0)
    k1, k2, k3, k4 = jax.random.split(key, 4)

    def check(xv, C, dtype=jnp.int8):
        y = jax.block_until_ready(one_hot(xv, C, dtype=dtype))
        ref = jax.nn.one_hot(xv, C, dtype=jnp.int32)
        assert y.shape == tuple(xv.shape) + (C,)
        assert y.dtype == jnp.dtype(dtype)
        assert bool(jnp.all(y.astype(jnp.int32) == ref))

    # 1) Module-sized example: C=32 -> lane-dense fold path (k=4, W=128), no padding.
    num_classes = 32
    x = jax.random.randint(k1, (2, 8), 0, num_classes, dtype=jnp.int32)
    y = jax.block_until_ready(OneHot(num_classes)(x))
    ref = jax.nn.one_hot(x, num_classes, dtype=jnp.int32)
    assert y.shape == (2, 8, num_classes)
    assert y.dtype == jnp.int8
    assert bool(jnp.all(y.astype(jnp.int32) == ref))

    # 2) Large C exercising the class-tiled wide path (TC=2048, 2 class chunks), int32 out.
    check(jax.random.randint(k2, (2, 8), 0, 4096, dtype=jnp.int32), 4096, dtype=jnp.int32)

    # 3) Ragged 1-D input exercising the pad + trailing-slice fallback on the fold path.
    check(jax.random.randint(k3, (37,), 0, num_classes, dtype=jnp.int32), num_classes)

    # 4) Non-power-of-two small C -> new lane-dense fold (W = lcm(21,128) = 2688).
    check(jax.random.randint(k4, (5, 8), 0, 21, dtype=jnp.int32), 21)

    print("KERNEL_OK")
</pallas_src>

<mosaic_0001>
module attributes {stable_mosaic.version = 11 : i64} {
  func.func @_one_hot_fold_kernel(%arg0: i32, %arg1: memref<4x4xi32, #tpu.memory_space<vmem>>, %arg2: memref<4x128xbf16, #tpu.memory_space<vmem>>, %arg3: memref<1x128xf32, #tpu.memory_space<vmem>>, %arg4: memref<4x128xi8, #tpu.memory_space<vmem>>) attributes {dimension_semantics = [#tpu.dimension_semantics<parallel>], iteration_bounds = array<i64: 1>, scalar_prefetch = 0 : i64, scratch_operands = 0 : i64, tpu.core_type = #tpu.core_type<tc>, window_params = [{transform_indices = @transform_0, window_bounds = array<i64: 4, 4>}, {pipeline_mode = #tpu.pipeline_mode<synchronous>, transform_indices = @transform_1, window_bounds = array<i64: 4, 128>}, {pipeline_mode = #tpu.pipeline_mode<synchronous>, transform_indices = @transform_2, window_bounds = array<i64: 1, 128>}, {transform_indices = @transform_3, window_bounds = array<i64: 4, 128>}]} {
    %c0 = arith.constant 0 : index
    %c0_0 = arith.constant 0 : index
    %0 = vector.load %arg1[%c0, %c0_0] : memref<4x4xi32, #tpu.memory_space<vmem>>, vector<4x4xi32>
    %1 = arith.sitofp %0 : vector<4x4xi32> to vector<4x4xbf16>
    %c0_1 = arith.constant 0 : index
    %c0_2 = arith.constant 0 : index
    %2 = vector.load %arg2[%c0_1, %c0_2] : memref<4x128xbf16, #tpu.memory_space<vmem>>, vector<4x128xbf16>
    %cst = arith.constant dense<0.000000e+00> : vector<4x128xf32>
    %3 = tpu.matmul %1, %2, %cst {dimension_numbers = #tpu.dot_dimension_numbers<[1], [0], [0], [1], [0, 0, 1, 1], [], []>} : vector<4x4xbf16>, vector<4x128xbf16>, vector<4x128xf32> -> vector<4x128xf32>
    %c0_3 = arith.constant 0 : index
    %c0_4 = arith.constant 0 : index
    %4 = vector.load %arg3[%c0_3, %c0_4] : memref<1x128xf32, #tpu.memory_space<vmem>>, vector<1x128xf32>
    %5 = vector.broadcast %4 : vector<1x128xf32> to vector<4x128xf32>
    %6 = arith.cmpf oeq, %3, %5 : vector<4x128xf32>
    %7 = arith.extui %6 : vector<4x128xi1> to vector<4x128xi8>
    %c0_5 = arith.constant 0 : index
    %c0_6 = arith.constant 0 : index
    %8 = vector.load %arg4[%c0_5, %c0_6] : memref<4x128xi8, #tpu.memory_space<vmem>>, vector<4x128xi8>
    tpu.vector_store %arg4[%c0_5, %c0_6], %7 {strides = array<i32>} : memref<4x128xi8, #tpu.memory_space<vmem>>, vector<4x128xi8>,
    return
  }
  func.func @transform_0(%arg0: i32) -> (i32, i32) {
    %c0_i32 = arith.constant 0 : i32
    %c0_i32_0 = arith.constant 0 : i32
    return %arg0, %c0_i32 : i32, i32
  }
  func.func @transform_1(%arg0: i32) -> (i32, i32) {
    %c0_i32 = arith.constant 0 : i32
    %c0_i32_0 = arith.constant 0 : i32
    %c0_i32_1 = arith.constant 0 : i32
    return %c0_i32, %c0_i32_0 : i32, i32
  }
  func.func @transform_2(%arg0: i32) -> (i32, i32) {
    %c0_i32 = arith.constant 0 : i32
    %c0_i32_0 = arith.constant 0 : i32
    %c0_i32_1 = arith.constant 0 : i32
    return %c0_i32, %c0_i32_0 : i32, i32
  }
  func.func @transform_3(%arg0: i32) -> (i32, i32) {
    %c0_i32 = arith.constant 0 : i32
    %c0_i32_0 = arith.constant 0 : i32
    return %arg0, %c0_i32 : i32, i32
  }
}

</mosaic_0001>

<bundles_post_ra>
// kernel: tpu_custom_call.1
= control target key start
LH: loop header
LB: loop body
LE: loop exit
PB: predicated region body
PF: predicated region fallthrough
CT: control target
= control target key end

     0   :  { %8 = vsyncpa [#allocation3], 0  ;;  %s227_s0 = inlined_call_operand.hbm [shape: s32[4,4], index: 0, kind: input, shape index: {}]   ;;  %s228_s1 = inlined_call_operand.vmem [shape: bf16[4,128], index: 1, kind: input, shape index: {}]   ;;  %s229_s2 = inlined_call_operand.vmem [shape: f32[1,128], index: 2, kind: input, shape index: {}]   ;;  %s230_s3 = inlined_call_operand.hbm [shape: s8[4,128], index: 3, kind: output, shape index: {}]  }
   0x1   :  { %9 = vsyncpa [#allocation4], 0  ;;  %s172_s12 = smov [#allocation2]   ;;  %s124_s16 = scalar_lea.hbm %s227_s0, 64 }
   0x2   :  { %s16_s13 = sshll.u32 %s172_s12, 4  ;;  %p125_p0 = scmp.ne.s32.totalorder %s227_s0, %s124_s16  ;;  %s17_s13 = int_to_ptr.vmem [resolvable:$true] %s16_s13 }
   0x3   :  { %p128_p1 = scmp.lt.u32.totalorder %s124_s16, %s227_s0 }
   0x5   :  { %p130_p2 = pnand %p128_p1, %p125_p0 }
   0x7   :  { %133 = shalt.err (!%p130_p2)
}
   0x8   :  { %s134_s21 = scalar_lea.vmem %s17_s13, 64  ;;  %p139_p4 = scmp.lt.s32.totalorder %s17_s13, %s17_s13 }
   0x9   :  { %p135_p3 = scmp.ne.s32.totalorder %s17_s13, %s134_s21  ;;  %p140_p5 = scmp.lt.s32.totalorder %s134_s21, %s134_s21 }
   0xb   :  { %p141_p6 = por %p140_p5, %p139_p4 }
   0xd   :  { %p142_p7 = pnand %p141_p6, %p135_p3 }
   0xf   :  { %145 = shalt.err (!%p142_p7)
}
  0x10   :  { %19 = dma.hbm_to_vmem [thread:$0]  %s227_s0, 64, %s17_s13, [#allocation3]  }
  0x11   :  { %168 = dma.done.wait [#allocation3], 64  }
  0x12   :  { %169 = vsyncadd [#allocation3], 4294967232  ;;  %v173_v0 = vmov 0.0   ;;  %vm174_vm0 = vmmov 0   ;;  %vm38_vm1 = vcmask 1041408   ;;  %vm34_vm2 = vcmask 31744  }
  0x13   :  { %113 = vmatprep.subr.bf16.mxu0 %v173_v0  ;;  %115 = vmatprep.mubr.msk.bf16.mxu0 %vm174_vm0, %v173_v0  ;;  %v33_v1 = vld [vmem:[%s228_s1] sm:$0x3]  ;;  %s175_s27 = smov [#allocation5]   ;;  %v176_v11 = vmov 0  }
  0x14   :  { %v30_v2 = vld [vmem:[#allocation2] sm:$0xf]  ;;  %v40_v3 = vsel %vm38_vm1, %v33_v1, 0  ;;  %s100_s28 = sshll.u32 %s175_s27, 4  ;;  %s101_s28 = int_to_ptr.vmem [resolvable:$true] %s100_s28 }
  0x15   :  { %v31_v4 = vcvt.s32.f32 %v30_v2  ;;  %114 = vmatpush3.bf16.msra.mxu0 %v40_v3  ;;  %v110_v6 = vld [vmem:[%s229_s2] ss:$0 sm:$0xff]  ;;  %s146_s1 = scalar_lea.vmem %s101_s28, 16  ;;  %s150_s29 = scalar_lea.vmem %s101_s28, 32 }
  0x16   :  { %p147_p8 = scmp.ne.s32.totalorder %s101_s28, %s146_s1  ;;  %p151_p9 = scmp.lt.s32.totalorder %s101_s28, %s101_s28 }
  0x17   :  { %v32_v5 = vpack.c.bf16 %v31_v4, %v31_v4  ;;  %p152_p10 = scmp.lt.s32.totalorder %s150_s29, %s146_s1 }
  0x19   :  { %116 = vmatmul.mubr.msk.bf16.vlgmr.msra.gmra.mrb[0].mxu0 %vm34_vm2, %v32_v5  ;;  %p153_p11 = por %p152_p10, %p151_p9 }
  0x1b   :  { %p154_p12 = pnand %p153_p11, %p147_p8 }
  0xec   :  { %v76_v7 = vpop.f32.mrb[0].mxu0 }
  0xed   :  { %vm89_vm3 = vcmp.eq.f32.partialorder %v76_v7, %v110_v6  ;;  %v117_v8 = vpop.f32.mrb[1].mxu0 }
  0xee   :  { %vm90_vm4 = vmpackc.low %vm89_vm3, %vm89_vm3  ;;  %v79_v9 = vpop.f32.mrb[2].mxu0 }
  0xef   :  { %vm91_vm5 = vmpackc.even %vm90_vm4, %vm90_vm4  ;;  %v118_v10 = vpop.f32.mrb[3].mxu0 }
  0xf0   :  { %v92_v12 = vsel %vm91_vm5, 16843009, %v176_v11 }
  0xf1   :  { %93 = vst [vmem:[#allocation5] sm:$0x1] %v92_v12 }
  0xf2   :  { %157 = shalt.err (!%p154_p12)
}
  0xf3   :  { %s158_s4 = scalar_lea.hbm %s230_s3, 16 }
  0xf4   :  { %p159_p13 = scmp.ne.s32.totalorder %s230_s3, %s158_s4  ;;  %p162_p0 = scmp.lt.u32.totalorder %s158_s4, %s230_s3 }
  0xf6   :  { %p164_p1 = pnand %p162_p0, %p159_p13 }
  0xf8   :  { %167 = shalt.err (!%p164_p1)
}
  0xf9   :  { %103 = dma.vmem_to_hbm [thread:$0]  %s101_s28, 16, %s230_s3, [#allocation4]  }
  0xfa   :  { %170 = dma.done.wait [#allocation4], 16  }
  0xfb   :  { %171 = vsyncadd [#allocation4], 4294967280 }
  0xfc   :  { %107 = vsyncpa [#allocation3], 1 }
  0xfd   :  { %108 = vsyncpa [#allocation4], 1 }

</bundles_post_ra>
